<compile_context>
chip_gen: v7x
topology: tpu7x:2x2x1
jax: 0.10.0
libtpu: 0.0.40
codegen_flags: <defaults>
</compile_context>

<pallas_src>
import jax
import jax.numpy as jnp
from jax.experimental import pallas as pl
from jax.experimental.pallas import tpu as pltpu

INPUT_DIM = 3
HIDDEN_DIM = 64
OUTPUT_DIM = 128
PADDED_INPUT = 8      # x padded to [x0, x1, x2, 1, 0, 0, 0, 0]
PADDED_HIDDEN = 128   # hidden padded to lane-dense width; column 64 carries a constant 1


def _round_up(n, m):
    return ((n + m - 1) // m) * m


def dvl_encoder_kernel(x_ref, w1_ref, w2_ref, w3_ref, feat_ref):
    # Layer 1 on the MXU: (tb, 8) @ (8, 128), f32 accumulate.
    #   b1 is folded into row 3 of w1 (x column 3 is the constant 1);
    #   w1[3, 64] == 1 plants the ones-column used to fold b2/b3 later.
    h1 = jnp.dot(x_ref[...], w1_ref[...], preferred_element_type=jnp.float32)
    h1 = jnp.maximum(h1.astype(jnp.bfloat16), 0)   # ReLU on bf16 vregs

    # Layer 2: bias folded into row 64 of w2; w2[64, 64] == 1 keeps the ones column.
    h2 = jnp.dot(h1, w2_ref[...], preferred_element_type=jnp.float32)
    h2 = jnp.maximum(h2.astype(jnp.bfloat16), 0)

    # Layer 3: bias folded into row 64 of w3. No activation.
    h3 = jnp.dot(h2, w3_ref[...], preferred_element_type=jnp.float32)
    feat_ref[...] = h3.astype(feat_ref.dtype)


def prepare_params(params):
    """One-time weight packing (hoisted out of the per-call path).

    Biases are folded into the matmuls via an augmented ones column, so the
    kernel body is exactly three matmuls plus two bf16 ReLUs.
    """
    w1, b1, w2, b2, w3, b3 = params
    b1 = jnp.reshape(b1, (HIDDEN_DIM,)).astype(jnp.float32)
    b2 = jnp.reshape(b2, (HIDDEN_DIM,)).astype(jnp.float32)
    b3 = jnp.reshape(b3, (OUTPUT_DIM,)).astype(jnp.float32)

    # Layer 1: (8, 128) f32. Rows 0..2 = w1, row 3 = b1 (bias lane), rows 4..7 = 0.
    w1p = jnp.zeros((PADDED_INPUT, PADDED_HIDDEN), jnp.float32)
    w1p = w1p.at[:INPUT_DIM, :HIDDEN_DIM].set(w1.astype(jnp.float32))
    w1p = w1p.at[INPUT_DIM, :HIDDEN_DIM].set(b1)
    w1p = w1p.at[INPUT_DIM, HIDDEN_DIM].set(1.0)          # ones column in h1

    # Layer 2: (128, 128) bf16. Row 64 = b2; [64, 64] = 1 carries the ones column.
    w2p = jnp.zeros((PADDED_HIDDEN, PADDED_HIDDEN), jnp.float32)
    w2p = w2p.at[:HIDDEN_DIM, :HIDDEN_DIM].set(w2.astype(jnp.float32))
    w2p = w2p.at[HIDDEN_DIM, :HIDDEN_DIM].set(b2)
    w2p = w2p.at[HIDDEN_DIM, HIDDEN_DIM].set(1.0)

    # Layer 3: (128, 128) bf16. Row 64 = b3.
    w3p = jnp.zeros((PADDED_HIDDEN, OUTPUT_DIM), jnp.float32)
    w3p = w3p.at[:HIDDEN_DIM, :].set(w3.astype(jnp.float32))
    w3p = w3p.at[HIDDEN_DIM, :].set(b3)

    return (w1p, w2p.astype(jnp.bfloat16), w3p.astype(jnp.bfloat16))


def dvl_encoder(x, prepared, *, block_b=4096, out_dtype=jnp.float32):
    """x: (B, INPUT_DIM) f32; prepared = prepare_params(raw params).

    Returns (features (B, OUTPUT_DIM) out_dtype, noise_cov (OUTPUT_DIM, OUTPUT_DIM) f32).
    Use out_dtype=jnp.bfloat16 on HBM-bandwidth-poor parts (v5e) if consumers accept it.
    """
    w1p, w2p, w3p = prepared
    B = x.shape[0]

    # Batch tiling: tb is always a multiple of 8 (f32 sublanes), large by default to
    # amortize per-step pipeline overhead, and capped so the parallel axis has >= 2
    # grid steps whenever the batch allows it (v7x megacore).
    b8 = _round_up(max(B, 1), 8)
    tb = min(_round_up(block_b, 8), b8)
    if b8 > 8 and tb >= b8:
        tb = _round_up(pl.cdiv(b8, 2), 8)
    b_pad = _round_up(B, tb)
    grid = (b_pad // tb,)

    # Pad x to (b_pad, 8): [x0, x1, x2, 1, 0, 0, 0, 0]; the 1 folds b1 into the matmul.
    xp = x.astype(jnp.float32)
    if b_pad != B:
        xp = jnp.pad(xp, ((0, b_pad - B), (0, 0)))
    x8 = jnp.concatenate(
        [xp,
         jnp.ones((b_pad, 1), jnp.float32),
         jnp.zeros((b_pad, PADDED_INPUT - INPUT_DIM - 1), jnp.float32)],
        axis=1)

    const = lambda shape: pl.BlockSpec(shape, lambda i: (0,) * len(shape))

    feat = pl.pallas_call(
        dvl_encoder_kernel,
        grid=grid,
        in_specs=[
            pl.BlockSpec((tb, PADDED_INPUT), lambda i: (i, 0)),     # x tile, pipelined
            const(w1p.shape), const(w2p.shape), const(w3p.shape),   # VMEM-resident weights
        ],
        out_specs=pl.BlockSpec((tb, OUTPUT_DIM), lambda i: (i, 0)),
        out_shape=jax.ShapeDtypeStruct((b_pad, OUTPUT_DIM), out_dtype),
        compiler_params=pltpu.CompilerParams(
            dimension_semantics=("parallel",)),                     # megacore-shardable
    )(x8, w1p, w2p, w3p)

    feat = feat[:B]
    # noise_cov is a compile-time constant — build it in the wrapper, not the kernel.
    noise_cov = jnp.eye(OUTPUT_DIM, dtype=jnp.float32) * 0.01
    return feat, noise_cov


def init_params(key):
    """Deterministic init; weights stored as (in, out), biases as (1, out)."""
    ks = jax.random.split(key, 6)

    def linear(kw, kb, fan_in, fan_out):
        bound = 1.0 / jnp.sqrt(fan_in)
        w = jax.random.uniform(kw, (fan_in, fan_out), jnp.float32, -bound, bound)
        b = jax.random.uniform(kb, (1, fan_out), jnp.float32, -bound, bound)
        return w, b

    w1, b1 = linear(ks[0], ks[1], INPUT_DIM, HIDDEN_DIM)
    w2, b2 = linear(ks[2], ks[3], HIDDEN_DIM, HIDDEN_DIM)
    w3, b3 = linear(ks[4], ks[5], HIDDEN_DIM, OUTPUT_DIM)
    return (w1, b1, w2, b2, w3, b3)


def reference(x, params):
    w1, b1, w2, b2, w3, b3 = params
    h = jnp.maximum(x @ w1 + b1, 0.0)
    h = jnp.maximum(h @ w2 + b2, 0.0)
    feat = h @ w3 + b3
    cov = jnp.eye(OUTPUT_DIM, dtype=jnp.float32) * 0.01
    return feat, cov


if __name__ == "__main__":
    key = jax.random.PRNGKey(0)
    k_x, k_p = jax.random.split(key)

    B = 20  # ragged on purpose: exercises tail padding + the >=2-step parallel grid
    x = jax.random.normal(k_x, (B, INPUT_DIM), jnp.float32)
    params = init_params(k_p)
    prepared = prepare_params(params)

    ref_feat, ref_cov = reference(x, params)

    # Default (large-block) path: tb is capped so the batch splits into 2 parallel steps.
    feat, cov = dvl_encoder(x, prepared)
    jax.block_until_ready((feat, cov))
    assert feat.shape == (B, OUTPUT_DIM)
    assert cov.shape == (OUTPUT_DIM, OUTPUT_DIM)
    # bf16 MXU inputs / folded bf16 biases with f32 accumulation -> small numerical diff.
    assert jnp.allclose(feat, ref_feat, atol=2e-2, rtol=2e-2)
    assert jnp.allclose(cov, ref_cov)

    # Small-block path: grid=(3,) exercises the pipelined batch loop.
    feat2, _ = dvl_encoder(x, prepared, block_b=8)
    jax.block_until_ready(feat2)
    assert jnp.allclose(feat2, ref_feat, atol=2e-2, rtol=2e-2)

    print("KERNEL_OK")
</pallas_src>

<mosaic_0001>
module attributes {stable_mosaic.version = 11 : i64} {
  func.func @dvl_encoder_kernel(%arg0: i32, %arg1: memref<16x8xf32, #tpu.memory_space<vmem>>, %arg2: memref<8x128xf32, #tpu.memory_space<vmem>>, %arg3: memref<128x128xbf16, #tpu.memory_space<vmem>>, %arg4: memref<128x128xbf16, #tpu.memory_space<vmem>>, %arg5: memref<16x128xf32, #tpu.memory_space<vmem>>) attributes {dimension_semantics = [#tpu.dimension_semantics<parallel>], iteration_bounds = array<i64: 2>, scalar_prefetch = 0 : i64, scratch_operands = 0 : i64, tpu.core_type = #tpu.core_type<tc>, window_params = [{transform_indices = @transform_0, window_bounds = array<i64: 16, 8>}, {pipeline_mode = #tpu.pipeline_mode<synchronous>, transform_indices = @transform_1, window_bounds = array<i64: 8, 128>}, {pipeline_mode = #tpu.pipeline_mode<synchronous>, transform_indices = @transform_2, window_bounds = array<i64: 128, 128>}, {pipeline_mode = #tpu.pipeline_mode<synchronous>, transform_indices = @transform_3, window_bounds = array<i64: 128, 128>}, {transform_indices = @transform_4, window_bounds = array<i64: 16, 128>}]} {
    %c0 = arith.constant 0 : index
    %c0_0 = arith.constant 0 : index
    %0 = vector.load %arg1[%c0, %c0_0] : memref<16x8xf32, #tpu.memory_space<vmem>>, vector<16x8xf32>
    %c0_1 = arith.constant 0 : index
    %c0_2 = arith.constant 0 : index
    %1 = vector.load %arg2[%c0_1, %c0_2] : memref<8x128xf32, #tpu.memory_space<vmem>>, vector<8x128xf32>
    %cst = arith.constant dense<0.000000e+00> : vector<16x128xf32>
    %2 = tpu.matmul %0, %1, %cst {dimension_numbers = #tpu.dot_dimension_numbers<[1], [0], [0], [1], [0, 0, 1, 1], [], []>} : vector<16x8xf32>, vector<8x128xf32>, vector<16x128xf32> -> vector<16x128xf32>
    %3 = arith.truncf %2 : vector<16x128xf32> to vector<16x128xbf16>
    %cst_3 = arith.constant 0.000000e+00 : bf16
    %4 = vector.broadcast %cst_3 : bf16 to vector<16x128xbf16>
    %5 = arith.maximumf %3, %4 : vector<16x128xbf16>
    %c0_4 = arith.constant 0 : index
    %c0_5 = arith.constant 0 : index
    %6 = vector.load %arg3[%c0_4, %c0_5] : memref<128x128xbf16, #tpu.memory_space<vmem>>, vector<128x128xbf16>
    %cst_6 = arith.constant dense<0.000000e+00> : vector<16x128xf32>
    %7 = tpu.matmul %5, %6, %cst_6 {dimension_numbers = #tpu.dot_dimension_numbers<[1], [0], [0], [1], [0, 0, 1, 1], [], []>} : vector<16x128xbf16>, vector<128x128xbf16>, vector<16x128xf32> -> vector<16x128xf32>
    %8 = arith.truncf %7 : vector<16x128xf32> to vector<16x128xbf16>
    %cst_7 = arith.constant 0.000000e+00 : bf16
    %9 = vector.broadcast %cst_7 : bf16 to vector<16x128xbf16>
    %10 = arith.maximumf %8, %9 : vector<16x128xbf16>
    %c0_8 = arith.constant 0 : index
    %c0_9 = arith.constant 0 : index
    %11 = vector.load %arg4[%c0_8, %c0_9] : memref<128x128xbf16, #tpu.memory_space<vmem>>, vector<128x128xbf16>
    %cst_10 = arith.constant dense<0.000000e+00> : vector<16x128xf32>
    %12 = tpu.matmul %10, %11, %cst_10 {dimension_numbers = #tpu.dot_dimension_numbers<[1], [0], [0], [1], [0, 0, 1, 1], [], []>} : vector<16x128xbf16>, vector<128x128xbf16>, vector<16x128xf32> -> vector<16x128xf32>
    %c0_11 = arith.constant 0 : index
    %c0_12 = arith.constant 0 : index
    %13 = vector.load %arg5[%c0_11, %c0_12] : memref<16x128xf32, #tpu.memory_space<vmem>>, vector<16x128xf32>
    tpu.vector_store %arg5[%c0_11, %c0_12], %12 {strides = array<i32>} : memref<16x128xf32, #tpu.memory_space<vmem>>, vector<16x128xf32>,
    return
  }
  func.func @transform_0(%arg0: i32) -> (i32, i32) {
    %c0_i32 = arith.constant 0 : i32
    %c0_i32_0 = arith.constant 0 : i32
    return %arg0, %c0_i32 : i32, i32
  }
  func.func @transform_1(%arg0: i32) -> (i32, i32) {
    %c0_i32 = arith.constant 0 : i32
    %c0_i32_0 = arith.constant 0 : i32
    %c0_i32_1 = arith.constant 0 : i32
    return %c0_i32, %c0_i32_0 : i32, i32
  }
  func.func @transform_2(%arg0: i32) -> (i32, i32) {
    %c0_i32 = arith.constant 0 : i32
    %c0_i32_0 = arith.constant 0 : i32
    %c0_i32_1 = arith.constant 0 : i32
    return %c0_i32, %c0_i32_0 : i32, i32
  }
  func.func @transform_3(%arg0: i32) -> (i32, i32) {
    %c0_i32 = arith.constant 0 : i32
    %c0_i32_0 = arith.constant 0 : i32
    %c0_i32_1 = arith.constant 0 : i32
    return %c0_i32, %c0_i32_0 : i32, i32
  }
  func.func @transform_4(%arg0: i32) -> (i32, i32) {
    %c0_i32 = arith.constant 0 : i32
    %c0_i32_0 = arith.constant 0 : i32
    return %arg0, %c0_i32 : i32, i32
  }
}

</mosaic_0001>

<bundles_post_ra>
// kernel: tpu_custom_call.1
= control target key start
LH: loop header
LB: loop body
LE: loop exit
PB: predicated region body
PF: predicated region fallthrough
CT: control target
= control target key end

     0   :  { %9 = vsyncpa [#allocation3], 0  ;;  %s1171_s0 = inlined_call_operand.vmem [shape: f32[32,8], index: 0, kind: input, shape index: {}]   ;;  %s1172_s1 = inlined_call_operand.vmem [shape: f32[8,128], index: 1, kind: input, shape index: {}]   ;;  %s1173_s2 = inlined_call_operand.hbm [shape: bf16[128,128], index: 2, kind: input, shape index: {}]   ;;  %s1174_s3 = inlined_call_operand.hbm [shape: bf16[128,128], index: 3, kind: input, shape index: {}]   ;;  %s1175_s4 = inlined_call_operand.hbm [shape: f32[32,128], index: 4, kind: output, shape index: {}]  }
   0x1   :  { %10 = vsyncpa [#allocation6], 0 }
   0x2   :  { %11 = vsyncpa [#allocation4], 0 }
   0x3   :  { %13 = vsyncpa [#allocation4 + $0x1], 0  ;;  %s976_s15 = smov 0   ;;  %s978_s16 = smov 0  }
   0x4   :  { %s980_s17 = smov 0   ;;  %s982_s18 = smov 0  }
   0x5 LB: > { %s997_s19 = sadd.s32 4294967295, %s939_s18   ;;  %s629_s20 = sadd.s32 4294967294, %s939_s18   ;;  %s939_s18 = sphi %s982_s18, %s1193_s18   ;;  %s935_s17 = sphi %s980_s17, %s1192_s17   ;;  %s931_s16 = sphi %s978_s16, %s1191_s16   ;;  %s927_s15 = sphi %s976_s15, %s1190_s15  }
   0x6   : > { %s1001_s21 = sadd.s32 1, %s939_s18   ;;  %s115_s22 = sadd.s32 1, %s935_s17 }
   0x7   : > { %s112_s23 = ssub.s32 %s939_s18, %s1001_s21  ;;  %p125_p0 = scmp.ne.s32.totalorder %s935_s17, %s931_s16 }
   0x8   : > { %p113_p1 = scmp.eq.s32.totalorder %s112_s23, 0  ;;  %p126_p2 = scmp.eq.s32.totalorder %s997_s19, 1 }
   0x9   : > { %p131_p3 = scmp.ne.s32.totalorder %s931_s16, %s927_s15  ;;  %p132_p4 = scmp.eq.s32.totalorder %s629_s20, 1 }
   0xa   : > { %s1012_s24 = scalar_select %p113_p1, %s935_s17, %s115_s22  }
   0xb   : > { %p1014_p5 = por %p126_p2, %p125_p0  ;;  %p1018_p6 = por %p132_p4, %p131_p3 }
   0xc   : > { %p630_p7 = scmp.ge.s32.totalorder %s939_s18, 1  ;;  %p139_p8 = scmp.lt.s32.totalorder %s939_s18, 3 }
   0xd   : > { %s1179_s25 = scalar_select %p1014_p5, 1, 0 }
   0xe   : > { %s1180_s26 = scalar_select %p1018_p6, 1, 0 }
   0xf   : > { %p1176_p9 = scmp.eq.s32.totalorder %s997_s19, 0  ;;  %p1025_p10 = pnand %p630_p7, %p139_p8 }
  0x10   : > { %s941_s28 = smov [#allocation2]   ;;  %s942_s5 = smov [#allocation5]  }
  0x11   : > { %s1181_s27 = scalar_select %p1025_p10, 1, 0 }
  0x12   : > { %s154_s29 = sshll.u32 %s941_s28, 4  ;;  %p740_p11 = pneg %p1025_p10  ;;  %s155_s29 = int_to_ptr.vmem [resolvable:$true] %s154_s29 }
  0x13   : > { %s167_s6 = sshll.u32 %s942_s5, 4  ;;  %s813_s9 = scalar_lea.hbm %s1173_s2, 1024  ;;  %s1037_s6 = int_to_ptr.vmem [resolvable:$true] %s167_s6 }
  0x14   : > { %p1033_p12 = pnand %p1176_p9, %p740_p11  ;;  %p814_p13 = scmp.ne.s32.totalorder %s1173_s2, %s813_s9 }
  0x15   : > { %p820_p3 = scmp.lt.u32.totalorder %s813_s9, %s1173_s2 }
  0x16   : > { %p815_p0 = pneg %p1033_p12 }
  0x18   : > { %p816_p1 = pnand %p815_p0, %p814_p13 }
  0x1a   : > { %p817_p2 = pneg %p816_p1 }
  0x1c   : > { %p822_p4 = pnand %p820_p3, %p817_p2 }
  0x1e   : > { %825 = shalt.err (!%p822_p4)
}
  0x1f   : > { %s826_s14 = scalar_lea.vmem %s155_s29, 1024  ;;  %p834_p9 = scmp.lt.s32.totalorder %s155_s29, %s155_s29 }
  0x20   : > { %p827_p7 = scmp.ne.s32.totalorder %s155_s29, %s826_s14  ;;  %p835_p6 = scmp.lt.s32.totalorder %s826_s14, %s826_s14 }
  0x22   : > { %p829_p8 = pnand %p827_p7, %p815_p0  ;;  %p836_p5 = por %p835_p6, %p834_p9 }
  0x24   : > { %p830_p11 = pneg %p829_p8 }
  0x26   : > { %p837_p10 = pnand %p836_p5, %p830_p11 }
  0x28   : > { %840 = shalt.err (!%p837_p10)
}
  0x29   : > { %s943_s20 = smov 64   ;;  %s944_s22 = smov 4  }
  0x2a   : > { %743 = dma.hbm_to_vmem [thread:$0]  (!%p1033_p12), %s1173_s2, 1024, %s155_s29, [#allocation3], %s943_s20, %s943_s20, %s944_s22  }
  0x2b   : > { %s841_s8 = scalar_lea.hbm %s1174_s3, 1024 }
  0x2c   : > { %p842_p13 = scmp.ne.s32.totalorder %s1174_s3, %s841_s8  ;;  %p848_p9 = scmp.lt.u32.totalorder %s841_s8, %s1174_s3 }
  0x2e   : > { %p844_p5 = pnand %p842_p13, %p815_p0 }
  0x30   : > { %p845_p6 = pneg %p844_p5 }
  0x32   : > { %p850_p10 = pnand %p848_p9, %p845_p6 }
  0x34   : > { %853 = shalt.err (!%p850_p10)
}
  0x35   : > { %s854_s29 = scalar_lea.vmem %s1037_s6, 1024  ;;  %p862_p4 = scmp.lt.s32.totalorder %s1037_s6, %s1037_s6 }
  0x36   : > { %p855_p1 = scmp.ne.s32.totalorder %s1037_s6, %s854_s29  ;;  %p863_p7 = scmp.lt.s32.totalorder %s854_s29, %s854_s29 }
  0x38   : > { %p857_p2 = pnand %p855_p1, %p815_p0  ;;  %p864_p8 = por %p863_p7, %p862_p4 }
  0x3a   : > { %p858_p3 = pneg %p857_p2 }
  0x3c   : > { %p865_p11 = pnand %p864_p8, %p858_p3 }
  0x3e   : > { %868 = shalt.err (!%p865_p11)
}
  0x3f   : > { %746 = dma.hbm_to_vmem [thread:$0]  (!%p1033_p12), %s1174_s3, 1024, %s1037_s6, [#allocation6], %s943_s20, %s943_s20, %s944_s22  }
  0x40   : > { %p1183_p13 = scmp.ne.s32.totalorder %s1181_s27, 0 }
  0x41   : > { %p1184_p5 = scmp.eq.s32.totalorder (!%p1183_p13), %s997_s19, 0 }
  0x42   : > { %192 = sbr.rel (%p1183_p13) target bundleno = 750 (0x2ee), region = 36 }
  0x49   : > { %914 = dma.done.wait (%p1184_p5), [#allocation3], 1024   ;;  %p1185_p0 = pmov %p1184_p5 }
  0x4b   : > { %916 = vsyncadd (%p1185_p0), [#allocation3], 4294966272  ;;  %p1186_p6 = pmov %p1185_p0 }
  0x4c   : > { %p1187_p9 = pmov %p1185_p0 }
  0x4d   : > { %918 = dma.done.wait (%p1186_p6), [#allocation6], 1024  }
  0x4e   : > { %920 = vsyncadd (%p1187_p9), [#allocation6], 4294966272  ;;  %s638_s30 = sshll.u32 %s997_s19, 1  ;;  %v945_v0 = vmov 0.0   ;;  %vm233_vm0 = vcmask 64512   ;;  %v232_v1 = vld [vmem:[%s1172_s1] sm:$0xff] }
  0x4f   : > { %p223_p10 = scmp.lt.s32.totalorder %s638_s30, 3  ;;  %690 = vmatprep.subr.bf16.mxu1 %v945_v0  ;;  %685 = vmatprep.subr.mxu0 %v232_v1  ;;  %v797_v4 = vld [vmem:[#allocation2] sm:$0xff]   ;;  %v798_v5 = vld [vmem:[#allocation2 + $0x8] sm:$0xff]   ;;  %v799_v6 = vld [vmem:[#allocation2 + $0x10] sm:$0xff]   ;;  %vm946_vm1 = vmmov 0   ;;  %v947_v21 = vmov 0  }
  0x50   : > { %686 = vmatpush3.msra.mxu0 %v232_v1  ;;  %691 = vmatpush3.bf16.msra.mxu1 %v797_v4  ;;  %v800_v7 = vld [vmem:[#allocation2 + $0x18] sm:$0xff]   ;;  %v801_v8 = vld [vmem:[#allocation2 + $0x20] sm:$0xff]   ;;  %v802_v9 = vld [vmem:[#allocation2 + $0x28] sm:$0xff]   ;;  %s219_s5 = sand.u32 1, %s931_s16   ;;  %s663_s10 = sshll.u32 %s997_s19, 8 }
  0x51   : > { %s1195_s30 = smov (!%p223_p10, %s638_s30), 3  ;;  %692 = vmatprep.subr.bf16.mxu1 %v945_v0  ;;  %710 = vmatprep.subr.bf16.mxu0 %v945_v0  ;;  %v803_v10 = vld [vmem:[#allocation2 + $0x30] sm:$0xff]   ;;  %v804_v11 = vld [vmem:[#allocation2 + $0x38] sm:$0xff]   ;;  %v805_v12 = vld [vmem:[#allocation5] sm:$0xff]   ;;  %s637_s7 = sshll.u32 %s219_s5, 4 }
  0x52   : > { %s639_s27 = sshll.u32 %s1195_s30, 3  ;;  %706 = vmatprep.mubr.msk.bf16.mxu1 %vm946_vm1, %v945_v0  ;;  %v806_v13 = vld [vmem:[#allocation5 + $0x8] sm:$0xff]   ;;  %v807_v14 = vld [vmem:[#allocation5 + $0x10] sm:$0xff]   ;;  %v808_v15 = vld [vmem:[#allocation5 + $0x18] sm:$0xff]   ;;  %s221_s8 = scalar_lea.vmem [#allocation7], %s637_s7 }
  0x53   : > { %s226_s22 = scalar_lea.vmem %s1171_s0, %s639_s27  ;;  %v809_v16 = vld [vmem:[#allocation5 + $0x20] sm:$0xff]   ;;  %v810_v17 = vld [vmem:[#allocation5 + $0x28] sm:$0xff]   ;;  %v811_v23 = vld [vmem:[#allocation5 + $0x30] sm:$0xff]   ;;  %s545_s9 = sshll.u32 %s221_s8, 4  ;;  %s1123_s9 = int_to_ptr.vmem [resolvable:$true] %s545_s9 }
  0x54   : > { %v230_v2 = vld [vmem:[%s226_s22] sm:$0xff]  ;;  %v231_v3 = vld [vmem:[%s226_s22 + $0x8] sm:$0xff]  ;;  %693 = vmatpush3.bf16.msra.mxu1 %v798_v5  ;;  %v812_v24 = vld [vmem:[#allocation5 + $0x38] sm:$0xff]   ;;  %s1128_s29 = scalar_lea.hbm %s1175_s4, %s663_s10  ;;  %s1130_s13 = scalar_lea.sflag [#allocation4], %s219_s5 }
  0x55   : > { %687 = vmatprep.mubr.msk.f32.mxu0 %vm233_vm0, %v230_v2  ;;  %694 = vmatprep.subr.bf16.mxu1 %v945_v0  ;;  %s869_s14 = scalar_lea.vmem %s1123_s9, 256  ;;  %p1188_p1 = scmp.ne.s32.totalorder %s1179_s25, 0 }
  0x56   : > { %688 = vmatmul.mubr.msk.f32.vlgmr.msra.gmra.mrb[0].mxu0 %vm233_vm0, %v231_v3  ;;  %p870_p12 = scmp.ne.s32.totalorder %s1123_s9, %s869_s14  ;;  %s948_s19 = smov [#allocation7]  }
  0x57   : > { %726 = vmatprep.mubr.msk.bf16.mxu0 %vm946_vm1, %v945_v0  ;;  %711 = vmatpush3.bf16.msra.mxu0 %v805_v12  ;;  %s873_s30 = sshll.u32 %s948_s19, 4  ;;  %s874_s30 = int_to_ptr.vmem [resolvable:$false] %s873_s30 }
  0x58   : > { %695 = vmatpush3.bf16.msra.mxu1 %v799_v6  ;;  %712 = vmatprep.subr.bf16.mxu0 %v945_v0  ;;  %p871_p2 = pnand %p870_p12, %p1188_p1  ;;  %s875_s27 = scalar_lea.vmem %s874_s30, 512 }
  0x59   : > { %696 = vmatprep.subr.bf16.mxu1 %v945_v0  ;;  %p876_p4 = scmp.lt.s32.totalorder %s1123_s9, %s874_s30  ;;  %p877_p7 = scmp.lt.s32.totalorder %s875_s27, %s869_s14 }
  0x5a   : > { %p872_p3 = pneg %p871_p2 }
  0x5b   : > { %713 = vmatpush3.bf16.msra.mxu0 %v806_v13  ;;  %p878_p8 = por %p877_p7, %p876_p4 }
  0x5c   : > { %697 = vmatpush3.bf16.msra.mxu1 %v800_v7  ;;  %714 = vmatprep.subr.bf16.mxu0 %v945_v0 }
  0x5d   : > { %698 = vmatprep.subr.bf16.mxu1 %v945_v0  ;;  %p879_p11 = pnand %p878_p8, %p872_p3 }
  0x5f   : > { %715 = vmatpush3.bf16.msra.mxu0 %v807_v14 }
  0x60   : > { %699 = vmatpush3.bf16.msra.mxu1 %v801_v8  ;;  %716 = vmatprep.subr.bf16.mxu0 %v945_v0 }
  0x61   : > { %700 = vmatprep.subr.bf16.mxu1 %v945_v0 }
  0x63   : > { %717 = vmatpush3.bf16.msra.mxu0 %v808_v15 }
  0x64   : > { %701 = vmatpush3.bf16.msra.mxu1 %v802_v9  ;;  %718 = vmatprep.subr.bf16.mxu0 %v945_v0 }
  0x65   : > { %702 = vmatprep.subr.bf16.mxu1 %v945_v0 }
  0x67   : > { %719 = vmatpush3.bf16.msra.mxu0 %v809_v16 }
  0x68   : > { %703 = vmatpush3.bf16.msra.mxu1 %v803_v10  ;;  %720 = vmatprep.subr.bf16.mxu0 %v945_v0 }
  0x69   : > { %704 = vmatprep.subr.bf16.mxu1 %v945_v0 }
  0x6b   : > { %721 = vmatpush3.bf16.msra.mxu0 %v810_v17 }
  0x6c   : > { %705 = vmatpush3.bf16.msra.mxu1 %v804_v11  ;;  %722 = vmatprep.subr.bf16.mxu0 %v945_v0 }
  0x6f   : > { %723 = vmatpush3.bf16.msra.mxu0 %v811_v23 }
  0x70   : > { %724 = vmatprep.subr.bf16.mxu0 %v945_v0 }
  0x73   : > { %725 = vmatpush3.bf16.msra.mxu0 %v812_v24 }
 0x129   : > { %v689_v18 = vpop.f32.mrb[0].mxu0 }
 0x12a   : > { %v306_v19 = vpop.f32.mrb[1].mxu0 }
 0x12b   : > { %v315_v20 = vpack.c.bf16 %v689_v18, %v306_v19 }
 0x12d   : > { %v316_v22 = vmax.bf16 %v947_v21, %v315_v20 }
 0x12f   : > { %707 = vmatmul.mubr.bf16.vlgmr.msra.gmra.mrb[0].mxu1 %v316_v22 }
 0x202   : > { %v415_v25 = vpop.f32.mrb[0].mxu1 }
 0x203   : > { %v708_v26 = vpop.f32.mrb[1].mxu1 }
 0x204   : > { %v418_v27 = vpop.f32.mrb[2].mxu1 }
 0x205   : > { %v422_v28 = vpack.c.bf16 %v418_v27, %v415_v25  ;;  %v709_v29 = vpop.f32.mrb[3].mxu1 }
 0x207   : > { %v423_v30 = vmax.bf16 %v947_v21, %v422_v28 }
 0x209   : > { %727 = vmatmul.mubr.bf16.vlgmr.msra.gmra.mrb[4].mxu0 %v423_v30 }
 0x2dc   : > { %v522_v31 = vpop.f32.mrb[4].mxu0 }
 0x2dd   : > { %529 = vst [vmem:[%s221_s8] sm:$0xff] %v522_v31  ;;  %v728_v32 = vpop.f32.mrb[5].mxu0 }
 0x2de   : > { %v525_v33 = vpop.f32.mrb[6].mxu0 }
 0x2df   : > { %530 = vst [vmem:[%s221_s8 + $0x8] sm:$0xff] %v525_v33  ;;  %v729_v34 = vpop.f32.mrb[7].mxu0 }
 0x2e0   : > { %882 = shalt.err (!%p879_p11)
}
 0x2e1   : > { %s883_s6 = scalar_lea.hbm %s1128_s29, 256  ;;  %s887_s23 = scalar_lea.hbm %s1175_s4, 512 }
 0x2e2   : > { %p884_p13 = scmp.ne.s32.totalorder %s1128_s29, %s883_s6  ;;  %p888_p6 = scmp.lt.u32.totalorder %s1128_s29, %s1175_s4 }
 0x2e3   : > { %p889_p9 = scmp.lt.u32.totalorder %s887_s23, %s883_s6  ;;  %p891_p12 = scmp.lt.u32.totalorder %s883_s6, %s1128_s29 }
 0x2e4   : > { %p885_p5 = pnand %p884_p13, %p1188_p1 }
 0x2e5   : > { %p890_p10 = por %p889_p9, %p888_p6 }
 0x2e6   : > { %p886_p0 = pneg %p885_p5 }
 0x2e7   : > { %p892_p2 = por %p891_p12, %p890_p10 }
 0x2e9   : > { %p893_p3 = pnand %p892_p2, %p886_p0 }
 0x2eb   : > { %896 = shalt.err (!%p893_p3)
}
 0x2ec   : > { %s949_s7 = smov 128   ;;  %s950_s8 = smov 8  }
 0x2ed   : > { %738 = dma.vmem_to_hbm [thread:$0]  (%p1188_p1), %s1123_s9, 256, %s1128_s29, %s1130_s13, %s949_s7, %s949_s7, %s950_s8  }
 0x2ee PF: > { %p755_p4 = scmp.ge.s32.totalorder %s939_s18, 2  ;;  %s560_s10 = sand.u32 1, %s927_s15  }
 0x2ef   : > { %p1189_p7 = scmp.ne.s32.totalorder %s1180_s26, 0  ;;  %s561_s11 = scalar_lea.sflag [#allocation4], %s560_s10 }
 0x2f1   : > { %p748_p8 = pnand %p755_p4, %p1189_p7 }
 0x2f3   : > { %922 = dma.done.wait (!%p748_p8), %s561_s11, 256  }
 0x2f4   : > { %924 = vsyncadd (!%p748_p8), %s561_s11, 4294967040  ;;  %p16_p11 = scmp.ge.s32.totalorder %s1001_s21, 4   ;;  %s1190_s15 = smov %s931_s16 }
 0x2f5   : > { %s1191_s16 = smov %s935_s17  ;;  %s1192_s17 = smov %s1012_s24 }
 0x2f6   : > { %s1193_s18 = smov %s1001_s21  ;;  %18 = sbr.rel (!%p16_p11) target bundleno = 5 (0x5), region = 80 }
 0x2fd   :  { %566 = vsyncpa [#allocation3], 1 }
 0x2fe   :  { %568 = vsyncpa [#allocation3 + $0x1], 1 }
 0x2ff   :  { %569 = vsyncpa [#allocation6], 1 }
 0x300   :  { %570 = vsyncpa [#allocation4], 1 }
 0x301   :  { %572 = vsyncpa [#allocation4 + $0x1], 1 }

</bundles_post_ra>
